<compile_context>
chip_gen: v6e
topology: v6e:2x2x1
jax: 0.10.0
libtpu: 0.0.40
codegen_flags: <defaults>
</compile_context>

<pallas_src>
import jax
import jax.numpy as jnp
from jax.experimental import pallas as pl
from jax.experimental.pallas import tpu as pltpu

NUM_FEATURES = 7    # dayofweek, time, sex, age, month, day, destination
LEAKY_SLOPE = 0.01  # nn.LeakyReLU() default negative_slope


def _round_up(x, m):
    return (x + m - 1) // m * m


def gmf_kernel(tables_ref, idx_ref, b_ref, out_ref):
    """One batch tile (batch on lanes, factors on sublanes).

    tables_ref: VMEM [7, 2*Fp, NV] bf16  hi/lo-split, padded, transposed tables
                (predict_layer weight already folded into the item table).
    idx_ref:    VMEM [7, 1, TB]    i32   per-feature row indices for this tile.
    b_ref:      SMEM [1, 1]        f32   predict_layer bias.
    out_ref:    VMEM [1, TB]       f32   LeakyReLU(sum_F(prod) + b).
    """
    _, two_fp, nv = tables_ref.shape
    fp = two_fp // 2
    tb = out_ref.shape[-1]

    # Loop-invariant iota over the (real, 8-rounded) vocab extent only.
    iota_v = jax.lax.broadcasted_iota(jnp.int32, (nv, tb), 0)        # [NV, TB]

    def gather(f):
        # Exact row gather: the one-hot is exact in bf16, so one native bf16
        # MXU pass gathers both the hi and lo halves; reconstruct in f32.
        onehot = (iota_v == idx_ref[f]).astype(jnp.bfloat16)         # [NV, TB]
        hl = jnp.dot(tables_ref[f], onehot,
                     preferred_element_type=jnp.float32)             # [2Fp, TB]
        return hl[:fp, :] + hl[fp:, :]                               # [Fp, TB]

    # Rolled loop keeps only one one-hot / gather temporary live at a time.
    prod = gather(0)
    prod = jax.lax.fori_loop(1, NUM_FEATURES,
                             lambda f, p: p * gather(f), prod,
                             unroll=False)

    # predict_layer: weight is pre-folded into the item table, so only the
    # sublane (XLU) reduction over factors + bias remains.
    logits = jnp.sum(prod, axis=0, keepdims=True) + b_ref[0, 0]      # [1, TB]

    # LeakyReLU, lane-dense store.
    out_ref[...] = jnp.where(logits >= 0, logits, LEAKY_SLOPE * logits)


def pack_gmf_tables(params):
    """One-time table packing (cache the result; do NOT rebuild per forward).

    Folds predict_layer.weight into the item table, pads vocab to a multiple
    of 8 and factors to a multiple of 8, transposes to [F, NV], and splits
    each f32 table into an exact (hi, lo) bf16 pair stacked along sublanes.
    Returns ([7, 2*Fp, NV] bf16, [1, 1] f32 bias).
    """
    tables = [params["emb_dayofweek"], params["emb_time"], params["emb_sex"],
              params["emb_age"], params["emb_month"], params["emb_day"],
              params["item_embedding"] * params["predict_w"][0][None, :]]
    num_factor = tables[0].shape[1]
    fp = _round_up(num_factor, 8)
    nv = _round_up(max(t.shape[0] for t in tables), 8)

    slabs = []
    for t in tables:
        t = jnp.pad(t.astype(jnp.float32),
                    ((0, nv - t.shape[0]), (0, fp - t.shape[1])))    # [NV, Fp]
        hi = t.astype(jnp.bfloat16)
        lo = (t - hi.astype(jnp.float32)).astype(jnp.bfloat16)
        slabs.append(jnp.concatenate([hi.T, lo.T], axis=0))          # [2Fp, NV]
    packed = jnp.stack(slabs, axis=0)                                # [7,2Fp,NV]
    bias = params["predict_b"].reshape(1, 1).astype(jnp.float32)
    return packed, bias


def gmf_forward(packed_tables, bias, dayofweek, time, sex, age, month, day,
                destination, *, tile_b=2048):
    """Launches the tiled Pallas kernel on pre-packed tables."""
    nf, two_fp, nv = packed_tables.shape

    idx = jnp.stack([dayofweek, time, sex, age, month, day, destination],
                    axis=0).astype(jnp.int32)                        # [7, B]
    b_sz = idx.shape[1]

    b_ru = _round_up(b_sz, 128)
    # Keep >= 2 grid steps when the batch allows it so v7x's two TensorCores
    # both get work on the "parallel" axis; tiles stay multiples of 128 lanes.
    tb = min(tile_b, max(128, _round_up(pl.cdiv(b_ru, 2), 128)))
    b_pad = _round_up(b_sz, tb)
    # Pad indices with 0 (row 0 exists in every table); padded lanes are
    # real-but-unused outputs and get sliced off below.
    idx = jnp.pad(idx, ((0, 0), (0, b_pad - b_sz)))[:, None, :]      # [7,1,Bp]

    grid = (b_pad // tb,)
    out = pl.pallas_call(
        gmf_kernel,
        out_shape=jax.ShapeDtypeStruct((1, b_pad), jnp.float32),
        grid=grid,
        in_specs=[
            # Constant block index -> the tiny table slab stays VMEM-resident
            # (no re-DMA across grid steps).
            pl.BlockSpec((nf, two_fp, nv), lambda i: (0, 0, 0)),
            pl.BlockSpec((nf, 1, tb), lambda i: (0, 0, i)),
            pl.BlockSpec(memory_space=pltpu.MemorySpace.SMEM),       # bias
        ],
        out_specs=pl.BlockSpec((1, tb), lambda i: (0, i)),
        compiler_params=pltpu.CompilerParams(
            dimension_semantics=("parallel",)),
        # NOTE: TB=2048 temporaries fit the default scoped-VMEM limit on
        # v5e/v6e/v7x; set vmem_limit_bytes here if tile_b is pushed > ~2048
        # on v5e (16 MiB default scoped limit).
    )(packed_tables, idx, bias)

    # output_GMF.view(-1)
    return out[0, :b_sz]


def init_params(key, num_factor, num_dayofweek, num_time, num_sex, num_age,
                num_month, num_day, num_destination):
    ks = jax.random.split(key, 9)

    def emb(k, n):
        # nn.init.normal_(..., mean=0.0, std=0.1)
        return 0.1 * jax.random.normal(k, (n, num_factor), dtype=jnp.float32)

    # kaiming_uniform_ for predict_layer.weight: bound = sqrt(6 / fan_in)
    bound = (6.0 / num_factor) ** 0.5
    params = {
        "emb_dayofweek": emb(ks[0], num_dayofweek),
        "emb_time":      emb(ks[1], num_time),
        "emb_sex":       emb(ks[2], num_sex),
        "emb_age":       emb(ks[3], num_age),
        "emb_month":     emb(ks[4], num_month),
        "emb_day":       emb(ks[5], num_day),
        "item_embedding": emb(ks[6], num_destination),
        "predict_w": jax.random.uniform(ks[7], (1, num_factor),
                                        minval=-bound, maxval=bound,
                                        dtype=jnp.float32),
        "predict_b": jax.random.uniform(ks[8], (1,),
                                        minval=-1.0 / num_factor ** 0.5,
                                        maxval=1.0 / num_factor ** 0.5,
                                        dtype=jnp.float32),
    }
    return params


def reference_forward(params, dayofweek, time, sex, age, month, day,
                      destination):
    """Pure-JAX reference (mirrors the PyTorch forward, use_NeuMF=False)."""
    user = (params["emb_dayofweek"][dayofweek]
            * params["emb_time"][time]
            * params["emb_sex"][sex]
            * params["emb_age"][age]
            * params["emb_month"][month]
            * params["emb_day"][day])
    vector = user * params["item_embedding"][destination]
    logits = jnp.sum(vector * params["predict_w"][0], axis=-1) \
        + params["predict_b"][0]
    out = jnp.where(logits >= 0, logits, LEAKY_SLOPE * logits)
    return out.reshape(-1)


if __name__ == "__main__":
    B = 8
    num_factor = 32
    num_dayofweek, num_time, num_sex = 7, 24, 2
    num_age, num_month, num_day = 6, 12, 31
    num_destination = 50

    key = jax.random.PRNGKey(0)
    kp, *kidx = jax.random.split(key, 8)

    params = init_params(kp, num_factor, num_dayofweek, num_time, num_sex,
                         num_age, num_month, num_day, num_destination)

    dayofweek   = jax.random.randint(kidx[0], (B,), 0, num_dayofweek)
    time        = jax.random.randint(kidx[1], (B,), 0, num_time)
    sex         = jax.random.randint(kidx[2], (B,), 0, num_sex)
    age         = jax.random.randint(kidx[3], (B,), 0, num_age)
    month       = jax.random.randint(kidx[4], (B,), 0, num_month)
    day         = jax.random.randint(kidx[5], (B,), 0, num_day)
    destination = jax.random.randint(kidx[6], (B,), 0, num_destination)

    # Pack tables once (cached across forward calls).
    packed_tables, bias = pack_gmf_tables(params)

    out = gmf_forward(packed_tables, bias, dayofweek, time, sex, age, month,
                      day, destination)
    out = jax.block_until_ready(out)

    ref = reference_forward(params, dayofweek, time, sex, age, month, day,
                            destination)
    assert out.shape == (B,)
    assert jnp.allclose(out, ref, atol=1e-5, rtol=1e-5)
    print("KERNEL_OK")
</pallas_src>

<mosaic_0001>
module attributes {stable_mosaic.version = 11 : i64} {
  func.func @gmf_kernel(%arg0: i32, %arg1: memref<7x64x56xbf16, #tpu.memory_space<vmem>>, %arg2: memref<7x1x128xi32, #tpu.memory_space<vmem>>, %arg3: memref<1x1xf32, #tpu.memory_space<smem>>, %arg4: memref<1x128xf32, #tpu.memory_space<vmem>>) attributes {dimension_semantics = [#tpu.dimension_semantics<parallel>], iteration_bounds = array<i64: 1>, scalar_prefetch = 0 : i64, scratch_operands = 0 : i64, tpu.core_type = #tpu.core_type<tc>, window_params = [{pipeline_mode = #tpu.pipeline_mode<synchronous>, transform_indices = @transform_0, window_bounds = array<i64: 7, 64, 56>}, {transform_indices = @transform_1, window_bounds = array<i64: 7, 1, 128>}, {transform_indices = @transform_2, window_bounds = array<i64: 1, 1>}, {transform_indices = @transform_3, window_bounds = array<i64: 1, 128>}]} {
    %0 = tpu.iota {dimensions = array<i32: 0>} : vector<56x128xi32>
    %c0 = arith.constant 0 : index
    %c0_0 = arith.constant 0 : index
    %c0_1 = arith.constant 0 : index
    %1 = vector.load %arg2[%c0, %c0_0, %c0_1] : memref<7x1x128xi32, #tpu.memory_space<vmem>>, vector<1x1x128xi32>
    %2 = vector.shape_cast %1 : vector<1x1x128xi32> to vector<1x128xi32>
    %3 = vector.broadcast %2 : vector<1x128xi32> to vector<56x128xi32>
    %4 = arith.cmpi eq, %0, %3 : vector<56x128xi32>
    %5 = arith.extui %4 : vector<56x128xi1> to vector<56x128xi32>
    %6 = arith.sitofp %5 : vector<56x128xi32> to vector<56x128xf32>
    %7 = arith.truncf %6 : vector<56x128xf32> to vector<56x128xbf16>
    %c0_2 = arith.constant 0 : index
    %c0_3 = arith.constant 0 : index
    %c0_4 = arith.constant 0 : index
    %8 = vector.load %arg1[%c0_2, %c0_3, %c0_4] : memref<7x64x56xbf16, #tpu.memory_space<vmem>>, vector<1x64x56xbf16>
    %9 = vector.shape_cast %8 : vector<1x64x56xbf16> to vector<64x56xbf16>
    %cst = arith.constant dense<0.000000e+00> : vector<64x128xf32>
    %10 = tpu.matmul %9, %7, %cst {dimension_numbers = #tpu.dot_dimension_numbers<[1], [0], [0], [1], [0, 0, 1, 1], [], []>} : vector<64x56xbf16>, vector<56x128xbf16>, vector<64x128xf32> -> vector<64x128xf32>
    %11 = vector.extract_strided_slice %10 {offsets = [0, 0], sizes = [32, 128], strides = [1, 1]} : vector<64x128xf32> to vector<32x128xf32>
    %12 = vector.extract_strided_slice %10 {offsets = [32, 0], sizes = [32, 128], strides = [1, 1]} : vector<64x128xf32> to vector<32x128xf32>
    %13 = arith.addf %11, %12 : vector<32x128xf32>
    %c1_i32 = arith.constant 1 : i32
    %c6_i32 = arith.constant 6 : i32
    %14 = arith.addi %c1_i32, %c6_i32 : i32
    %c1_i32_5 = arith.constant 1 : i32
    %15 = scf.for %arg5 = %c1_i32 to %14 step %c1_i32_5 iter_args(%arg6 = %13) -> (vector<32x128xf32>)  : i32 {
      %27 = arith.index_cast %arg5 : i32 to index
      %c0_14 = arith.constant 0 : index
      %c0_15 = arith.constant 0 : index
      %28 = vector.load %arg2[%27, %c0_14, %c0_15] : memref<7x1x128xi32, #tpu.memory_space<vmem>>, vector<1x1x128xi32>
      %29 = vector.shape_cast %28 : vector<1x1x128xi32> to vector<1x128xi32>
      %30 = vector.broadcast %29 : vector<1x128xi32> to vector<56x128xi32>
      %31 = arith.cmpi eq, %0, %30 : vector<56x128xi32>
      %32 = arith.extui %31 : vector<56x128xi1> to vector<56x128xi32>
      %33 = arith.sitofp %32 : vector<56x128xi32> to vector<56x128xf32>
      %34 = arith.truncf %33 : vector<56x128xf32> to vector<56x128xbf16>
      %35 = arith.index_cast %arg5 : i32 to index
      %c0_16 = arith.constant 0 : index
      %c0_17 = arith.constant 0 : index
      %36 = vector.load %arg1[%35, %c0_16, %c0_17] : memref<7x64x56xbf16, #tpu.memory_space<vmem>>, vector<1x64x56xbf16>
      %37 = vector.shape_cast %36 : vector<1x64x56xbf16> to vector<64x56xbf16>
      %cst_18 = arith.constant dense<0.000000e+00> : vector<64x128xf32>
      %38 = tpu.matmul %37, %34, %cst_18 {dimension_numbers = #tpu.dot_dimension_numbers<[1], [0], [0], [1], [0, 0, 1, 1], [], []>} : vector<64x56xbf16>, vector<56x128xbf16>, vector<64x128xf32> -> vector<64x128xf32>
      %39 = vector.extract_strided_slice %38 {offsets = [0, 0], sizes = [32, 128], strides = [1, 1]} : vector<64x128xf32> to vector<32x128xf32>
      %40 = vector.extract_strided_slice %38 {offsets = [32, 0], sizes = [32, 128], strides = [1, 1]} : vector<64x128xf32> to vector<32x128xf32>
      %41 = arith.addf %39, %40 : vector<32x128xf32>
      %42 = arith.mulf %arg6, %41 : vector<32x128xf32>
      scf.yield %42 : vector<32x128xf32>
    }
    %c6_i32_6 = arith.constant 6 : i32
    %cst_7 = arith.constant dense<0.000000e+00> : vector<128xf32>
    %16 = vector.multi_reduction <add>, %15, %cst_7 [0] : vector<32x128xf32> to vector<128xf32>
    %17 = vector.shape_cast %16 : vector<128xf32> to vector<1x128xf32>
    %c0_8 = arith.constant 0 : index
    %c0_9 = arith.constant 0 : index
    %18 = memref.load %arg3[%c0_8, %c0_9] : memref<1x1xf32, #tpu.memory_space<smem>>
    %19 = vector.broadcast %18 : f32 to vector<1x128xf32>
    %20 = arith.addf %17, %19 : vector<1x128xf32>
    %cst_10 = arith.constant 0.000000e+00 : f32
    %21 = vector.broadcast %cst_10 : f32 to vector<1x128xf32>
    %22 = arith.cmpf oge, %20, %21 : vector<1x128xf32>
    %cst_11 = arith.constant 0.00999999977 : f32
    %23 = vector.broadcast %cst_11 : f32 to vector<1x128xf32>
    %24 = arith.mulf %23, %20 : vector<1x128xf32>
    %25 = arith.select %22, %20, %24 : vector<1x128xi1>, vector<1x128xf32>
    %c0_12 = arith.constant 0 : index
    %c0_13 = arith.constant 0 : index
    %26 = vector.load %arg4[%c0_12, %c0_13] : memref<1x128xf32, #tpu.memory_space<vmem>>, vector<1x128xf32>
    tpu.vector_store %arg4[%c0_12, %c0_13], %25 {strides = array<i32>} : memref<1x128xf32, #tpu.memory_space<vmem>>, vector<1x128xf32>,
    return
  }
  func.func @transform_0(%arg0: i32) -> (i32, i32, i32) {
    %c0_i32 = arith.constant 0 : i32
    %c0_i32_0 = arith.constant 0 : i32
    %c0_i32_1 = arith.constant 0 : i32
    %c0_i32_2 = arith.constant 0 : i32
    return %c0_i32, %c0_i32_0, %c0_i32_1 : i32, i32, i32
  }
  func.func @transform_1(%arg0: i32) -> (i32, i32, i32) {
    %c0_i32 = arith.constant 0 : i32
    %c0_i32_0 = arith.constant 0 : i32
    %c0_i32_1 = arith.constant 0 : i32
    return %c0_i32, %c0_i32_0, %arg0 : i32, i32, i32
  }
  func.func @transform_2(%arg0: i32) -> (i32, i32) {
    %c0_i32 = arith.constant 0 : i32
    %c0_i32_0 = arith.constant 0 : i32
    %c0_i32_1 = arith.constant 0 : i32
    return %c0_i32, %c0_i32_0 : i32, i32
  }
  func.func @transform_3(%arg0: i32) -> (i32, i32) {
    %c0_i32 = arith.constant 0 : i32
    %c0_i32_0 = arith.constant 0 : i32
    return %c0_i32, %arg0 : i32, i32
  }
}

</mosaic_0001>

<bundles_post_ra>
// kernel: tpu_custom_call.1
= control target key start
LH: loop header
LB: loop body
LE: loop exit
PB: predicated region body
PF: predicated region fallthrough
CT: control target
= control target key end

     0   :  { %s769_s0 = inlined_call_operand.vmem [shape: bf16[7,64,56], index: 0, kind: input, shape index: {}]   ;;  %s770_s1 = inlined_call_operand.vmem [shape: s32[7,1,128], index: 1, kind: input, shape index: {}]   ;;  %s771_s2 = inlined_call_operand.<no memory space> [shape: f32[1,1], index: 2, kind: input, shape index: {}]   ;;  %s772_s3 = inlined_call_operand.hbm [shape: f32[1,128], index: 3, kind: output, shape index: {}]  }
   0x1   :  { %8 = sst [smem:[#allocation2]] %s771_s2 }
   0x2   :  { %9 = vsyncpa [#allocation4], 0  ;;  %v17_v0 = vlaneseq  ;;  %v379_v1 = vld [vmem:[%s770_s1] ss:$0 sm:$0xff]  ;;  %vm83_vm0 = vcmask 457728   ;;  %v540_v4 = vld [vmem:[%s769_s0 + $0x10] sm:$0xff]  }
   0x3   :  { %v539_v3 = vld [vmem:[%s769_s0] sm:$0xff]   ;;  %454 = vmatprep.mubr.msk.bf16.mxu1 %vm83_vm0, %v540_v4  ;;  %v609_v10 = vmov 0.0   ;;  %vm96_vm4 = vcmask 1043456   ;;  %v610_v16 = vmov 1.0|1.0   ;;  %v541_v17 = vld [vmem:[%s769_s0 + $0x8] sm:$0xff]  }
   0x4   :  { %v640_v2 = vshrl.u32 %v17_v0, 7  ;;  %450 = vmatprep.mubr.msk.bf16.mxu0 %vm83_vm0, %v539_v3  ;;  %v542_v18 = vld [vmem:[%s769_s0 + $0x18] sm:$0xff]   ;;  %s706_s23 = smov 1  }
   0x6   :  { %v649_v5 = vadd.s32 48, %v640_v2  ;;  %v652_v6 = vadd.s32 32, %v640_v2  ;;  %v655_v7 = vadd.s32 40, %v640_v2  ;;  %v660_v8 = vadd.s32 16, %v640_v2 }
   0x7   :  { %v666_v9 = vadd.s32 24, %v640_v2  ;;  %v678_v15 = vadd.s32 8, %v640_v2  ;;  %vm30_vm9 = vcmp.eq.s32.totalorder %v640_v2, %v379_v1 }
   0x8   :  { %vm36_vm1 = vcmp.eq.s32.totalorder %v649_v5, %v379_v1  ;;  %vm34_vm2 = vcmp.eq.s32.totalorder %v652_v6, %v379_v1  ;;  %vm35_vm3 = vcmp.eq.s32.totalorder %v655_v7, %v379_v1  ;;  %vm32_vm6 = vcmp.eq.s32.totalorder %v660_v8, %v379_v1 }
   0x9   :  { %v386_v11 = vsel %vm36_vm1, 1.0, %v609_v10  ;;  %vm668_vm5 = vmpackc.low %vm35_vm3, %vm34_vm2  ;;  %vm33_vm7 = vcmp.eq.s32.totalorder %v666_v9, %v379_v1  ;;  %vm31_vm10 = vcmp.eq.s32.totalorder %v678_v15, %v379_v1 }
   0xa   :  { %v54_v12 = vpack.c.bf16 %v386_v11, %v386_v11  ;;  %vm393_vm8 = vmpackc.low %vm33_vm7, %vm32_vm6 }
   0xb   :  { %vm395_vm11 = vmpackc.low %vm31_vm10, %vm30_vm9 }
   0xc   :  { %490 = vmatprep.subr.msk.bf16.mxu0 %vm96_vm4, %v54_v12  ;;  %491 = vmatprep.subr.msk.bf16.mxu1 %vm96_vm4, %v54_v12  ;;  %v98_v14 = vsel %vm96_vm4, %v54_v12, 0 }
   0xd   :  { %443 = vmatpush3.bf16.msra.mxu0 %v98_v14  ;;  %478 = vmatpush3.bf16.msra.mxu1 %v98_v14 }
   0xe   :  { %444 = vmatprep.subr.msk.bf16.mxu0 %vm668_vm5, %v610_v16  ;;  %475 = vmatprep.subr.msk.bf16.mxu1 %vm668_vm5, %v610_v16 }
  0x11   :  { %445 = vmatpush3.bf16.msk.msra.mxu0 %vm668_vm5, %v610_v16  ;;  %479 = vmatpush3.bf16.msk.msra.mxu1 %vm668_vm5, %v610_v16 }
  0x12   :  { %446 = vmatprep.subr.msk.bf16.mxu0 %vm393_vm8, %v610_v16  ;;  %476 = vmatprep.subr.msk.bf16.mxu1 %vm393_vm8, %v610_v16 }
  0x15   :  { %447 = vmatpush3.bf16.msk.msra.mxu0 %vm393_vm8, %v610_v16  ;;  %480 = vmatpush3.bf16.msk.msra.mxu1 %vm393_vm8, %v610_v16 }
  0x16   :  { %448 = vmatprep.subr.msk.bf16.mxu0 %vm395_vm11, %v610_v16  ;;  %477 = vmatprep.subr.msk.bf16.mxu1 %vm395_vm11, %v610_v16 }
  0x19   :  { %449 = vmatpush3.bf16.msk.msra.mxu0 %vm395_vm11, %v610_v16  ;;  %481 = vmatpush3.bf16.msk.msra.mxu1 %vm395_vm11, %v610_v16 }
  0x1c   :  { %451 = vmatmul.mubr.msk.bf16.vlgmr.msra.gmra.mxu0 %vm83_vm0, %v541_v17  ;;  %455 = vmatmul.mubr.msk.bf16.vlgmr.msra.gmra.mxu1 %vm83_vm0, %v542_v18 }
  0xdc   :  { %v452_v19 = vpop.f32.mrf.mxu0  ;;  %v456_v20 = vpop.f32.mrf.mxu1 }
  0xdd   :  { %v167_v21 = vadd.f32 %v456_v20, %v452_v19  }
  0xde   :  { %v134_v22 = vpop.f32.mrf.mxu0  ;;  %v150_v23 = vpop.f32.mrf.mxu1 }
  0xdf   :  { %v165_v24 = vadd.f32 %v150_v23, %v134_v22  }
  0xe0   :  { %v453_v25 = vpop.f32.mrf.mxu0  ;;  %v457_v26 = vpop.f32.mrf.mxu1 }
  0xe1   :  { %v168_v27 = vadd.f32 %v457_v26, %v453_v25  }
  0xe2   :  { %v137_v28 = vpop.f32.mrf.mxu0  ;;  %v153_v29 = vpop.f32.mrf.mxu1 }
  0xe3   :  { %v166_v30 = vadd.f32 %v153_v29, %v137_v28  }
  0xe4 LB: > { %s179_s26 = scalar_lea.vmem %s770_s1, %s607_s23  ;;  %s425_s27 = sshll.u32 %s607_s23, 5  ;;  %v611_v33 = vmov 0.0   ;;  %v612_v39 = vmov 1.0|1.0   ;;  %s607_s23 = sphi %s706_s23, %s174_s23   ;;  %v603_v24 = vphi %v165_v24, %v780_v24   ;;  %v599_v30 = vphi %v166_v30, %v779_v30   ;;  %v595_v21 = vphi %v167_v21, %v778_v21   ;;  %v591_v27 = vphi %v168_v27, %v777_v27  }
  0xe5   : > { %v401_v31 = vld [vmem:[%s179_s26] ss:$0 sm:$0xff]  ;;  %s723_s30 = scalar_lea.vmem %s769_s0, %s425_s27  ;;  %s174_s23 = sadd.s32 1, %s607_s23  }
  0xe6   : > { %vm191_vm12 = vcmp.eq.s32.totalorder %v649_v5, %v401_v31  ;;  %vm189_vm13 = vcmp.eq.s32.totalorder %v652_v6, %v401_v31  ;;  %vm190_vm14 = vcmp.eq.s32.totalorder %v655_v7, %v401_v31  ;;  %v543_v32 = vld [vmem:[%s723_s30] sm:$0xff]   ;;  %v544_v37 = vld [vmem:[%s723_s30 + $0x10] sm:$0xff]   ;;  %vm187_vm1 = vcmp.eq.s32.totalorder %v660_v8, %v401_v31  ;;  %v545_v40 = vld [vmem:[%s723_s30 + $0x8] sm:$0xff]   ;;  %p171_p0 = scmp.ge.s32.totalorder %s174_s23, 7  }
  0xe7   : > { %v408_v34 = vsel %vm191_vm12, 1.0, %v611_v33  ;;  %466 = vmatprep.mubr.msk.bf16.mxu0 %vm83_vm0, %v543_v32  ;;  %vm730_vm15 = vmpackc.low %vm190_vm14, %vm189_vm13  ;;  %vm188_vm2 = vcmp.eq.s32.totalorder %v666_v9, %v401_v31  ;;  %470 = vmatprep.mubr.msk.bf16.mxu1 %vm83_vm0, %v544_v37  ;;  %vm185_vm5 = vcmp.eq.s32.totalorder %v640_v2, %v401_v31  ;;  %vm186_vm6 = vcmp.eq.s32.totalorder %v678_v15, %v401_v31  ;;  %v546_v41 = vld [vmem:[%s723_s30 + $0x18] sm:$0xff]   ;;  %s338_s4 = sld [smem:[#allocation2]] (%p171_p0)  ;;  %s613_s5 = smov (%p171_p0), [#allocation3]  }
  0xe8   : > { %v209_v35 = vpack.c.bf16 %v408_v34, %v408_v34  ;;  %vm417_vm3 = vmpackc.low %vm188_vm2, %vm187_vm1  ;;  %s351_s6 = sshll.u32 (%p171_p0), %s613_s5, 4  ;;  %s352_s6 = int_to_ptr.vmem [resolvable:$true] %s351_s6 }
  0xe9   : > { %vm419_vm7 = vmpackc.low %vm186_vm6, %vm185_vm5  ;;  %s547_s7 = scalar_lea.vmem (%p171_p0), %s352_s6, 16  ;;  %s551_s0 = scalar_lea.vmem (%p171_p0), %s352_s6, 32 }
  0xea   : > { %492 = vmatprep.subr.msk.bf16.mxu0 %vm96_vm4, %v209_v35  ;;  %493 = vmatprep.subr.msk.bf16.mxu1 %vm96_vm4, %v209_v35  ;;  %v254_v38 = vsel %vm96_vm4, %v209_v35, 0  ;;  %p548_p1 = scmp.ne.s32.totalorder (%p171_p0), %s352_s6, %s547_s7  ;;  %p552_p2 = scmp.lt.s32.totalorder (%p171_p0), %s352_s6, %s352_s6 }
  0xeb   : > { %459 = vmatpush3.bf16.msra.mxu0 %v254_v38  ;;  %486 = vmatpush3.bf16.msra.mxu1 %v254_v38  ;;  %p553_p3 = scmp.lt.s32.totalorder (%p171_p0), %s551_s0, %s547_s7 }
  0xec   : > { %460 = vmatprep.subr.msk.bf16.mxu0 %vm730_vm15, %v612_v39  ;;  %483 = vmatprep.subr.msk.bf16.mxu1 %vm730_vm15, %v612_v39 }
  0xed   :  { %v339_v3 = vstv (%p171_p0), %s338_s4  ;;  %p554_p4 = por (%p171_p0), %p553_p3, %p552_p2 }
  0xef   : > { %461 = vmatpush3.bf16.msk.msra.mxu0 %vm730_vm15, %v612_v39  ;;  %487 = vmatpush3.bf16.msk.msra.mxu1 %vm730_vm15, %v612_v39  ;;  %p555_p5 = pnand (%p171_p0), %p554_p4, %p548_p1 }
  0xf0   : > { %462 = vmatprep.subr.msk.bf16.mxu0 %vm417_vm3, %v612_v39  ;;  %484 = vmatprep.subr.msk.bf16.mxu1 %vm417_vm3, %v612_v39 }
  0xf3   : > { %463 = vmatpush3.bf16.msk.msra.mxu0 %vm417_vm3, %v612_v39  ;;  %488 = vmatpush3.bf16.msk.msra.mxu1 %vm417_vm3, %v612_v39 }
  0xf4   : > { %464 = vmatprep.subr.msk.bf16.mxu0 %vm419_vm7, %v612_v39  ;;  %485 = vmatprep.subr.msk.bf16.mxu1 %vm419_vm7, %v612_v39 }
  0xf7   : > { %465 = vmatpush3.bf16.msk.msra.mxu0 %vm419_vm7, %v612_v39  ;;  %489 = vmatpush3.bf16.msk.msra.mxu1 %vm419_vm7, %v612_v39 }
  0xfa   : > { %467 = vmatmul.mubr.msk.bf16.vlgmr.msra.gmra.mxu0 %vm83_vm0, %v545_v40  ;;  %471 = vmatmul.mubr.msk.bf16.vlgmr.msra.gmra.mxu1 %vm83_vm0, %v546_v41 }
 0x1ba   : > { %v468_v42 = vpop.f32.mrf.mxu0  ;;  %v472_v43 = vpop.f32.mrf.mxu1 }
 0x1bb   : > { %v323_v44 = vadd.f32 %v472_v43, %v468_v42 }
 0x1bc   : > { %v290_v45 = vpop.f32.mrf.mxu0  ;;  %v306_v46 = vpop.f32.mrf.mxu1 }
 0x1bd   : > { %v327_v47 = vmul.f32 %v595_v21, %v323_v44   ;;  %v321_v48 = vadd.f32 %v306_v46, %v290_v45 }
 0x1be   : > { %v469_v49 = vpop.f32.mrf.mxu0  ;;  %v473_v50 = vpop.f32.mrf.mxu1 }
 0x1bf   : > { %v325_v51 = vmul.f32 %v603_v24, %v321_v48   ;;  %v324_v52 = vadd.f32 %v473_v50, %v469_v49  ;;  %v778_v21 = vmov %v327_v47 }
 0x1c0   : > { %v293_v53 = vpop.f32.mrf.mxu0  ;;  %v309_v54 = vpop.f32.mrf.mxu1 }
 0x1c1   : > { %v328_v55 = vmul.f32 %v591_v27, %v324_v52   ;;  %v322_v56 = vadd.f32 %v309_v54, %v293_v53  ;;  %v780_v24 = vmov %v325_v51  ;;  %173 = sbr.rel (!%p171_p0) target bundleno = 228 (0xe4), region = 41 }
 0x1c3   : > { %v326_v57 = vmul.f32 %v599_v30, %v322_v56   ;;  %v777_v27 = vmov %v328_v55 }
 0x1c5   : > { %v779_v30 = vmov %v326_v57  ;;  %v329_v58 = vadd.f32 (%p171_p0), %v326_v57, %v325_v51 }
 0x1c7   :  { %v330_v59 = vadd.f32 %v329_v58, %v327_v47 }
 0x1c9   :  { %v331_v60 = vadd.f32 %v330_v59, %v328_v55 }
 0x1cb   :  { %v332_v61 = vrot.slane %v331_v60, 4 }
 0x1cd   :  { %v333_v62 = vadd.f32 %v332_v61, %v331_v60 }
 0x1cf   :  { %v334_v63 = vrot.slane %v333_v62, 2 }
 0x1d1   :  { %v335_v0 = vadd.f32 %v334_v63, %v333_v62 }
 0x1d3   :  { %v336_v1 = vrot.slane %v335_v0, 1 }
 0x1d5   :  { %v337_v4 = vadd.f32 %v336_v1, %v335_v0 }
 0x1d7   :  { %v340_v10 = vadd.f32 %v339_v3, %v337_v4 }
 0x1d9   :  { %vm341_vm8 = vcmp.ge.f32.partialorder %v340_v10, 0.0  ;;  %v342_v11 = vmul.f32 0.01, %v340_v10 }
 0x1db   :  { %v343_v12 = vsel %vm341_vm8, %v340_v10, %v342_v11 }
 0x1dc   :  { %344 = vst [vmem:[#allocation3] sm:$0x1] %v343_v12 }
 0x1dd   :  { %558 = shalt.err (!%p555_p5)
}
 0x1de   :  { %354 = dma.vmem_to_hbm [thread:$0]  %s352_s6, 16, %s772_s3, [#allocation4]  }
 0x1df   :  { %587 = dma.done.wait [#allocation4], 16  }
 0x1e0   :  { %588 = vsyncadd [#allocation4], 4294967280 }
 0x1e1   :  { %358 = vsyncpa [#allocation4], 1 }

</bundles_post_ra>
